<compile_context>
chip_gen: v7x
topology: tpu7x:2x2x1
jax: 0.10.0
libtpu: 0.0.40
codegen_flags: <defaults>
</compile_context>

<pallas_src>
import jax
import jax.numpy as jnp
from jax.experimental import pallas as pl
from jax.experimental.pallas import tpu as pltpu


def _gru_kernel(x_ref, wih_ref, whh_ref, bx_ref, bhn_ref, out_ref, xp_ref):
    # x_ref   : (T*B, in_dim)  time-major, flattened over (T, B)
    # wih_ref : (in_dim, 3H)   fused [W_ir | W_iz | W_in]
    # whh_ref : (H, 3H)        fused [W_hr | W_hz | W_hn]
    # bx_ref  : (1, 3H)        [b_ir+b_hr | b_iz+b_hz | b_in]
    # bhn_ref : (1, H)         b_hn (must stay inside r * (...))
    # out_ref : (B, H)
    # xp_ref  : (T*B, 3H)      VMEM scratch for hoisted input projections
    B, H = out_ref.shape
    T = x_ref.shape[0] // B

    # Hoisted input projection for ALL timesteps: one fused MXU matmul, biases folded.
    xp_ref[...] = (
        jnp.dot(x_ref[...], wih_ref[...], preferred_element_type=jnp.float32)
        + bx_ref[...]
    )

    whh = whh_ref[...]    # (H, 3H) hidden-side fused weights (loaded once)
    b_hn = bhn_ref[...]   # (1, H)

    def step(t, h_prev):
        row = pl.multiple_of(t * B, B)
        g_x = xp_ref[pl.ds(row, B), :]                                    # (B, 3H)
        g_h = jnp.dot(h_prev, whh, preferred_element_type=jnp.float32)    # (B, 3H)
        r = jax.nn.sigmoid(g_x[:, :H] + g_h[:, :H])
        z = jax.nn.sigmoid(g_x[:, H:2 * H] + g_h[:, H:2 * H])
        n = jnp.tanh(g_x[:, 2 * H:] + r * (g_h[:, 2 * H:] + b_hn))
        return (1.0 - z) * n + z * h_prev

    h0 = jnp.zeros((B, H), jnp.float32)
    h_final = jax.lax.fori_loop(0, T, step, h0, unroll=True)

    # output[:, -1] of a unidirectional GRU == final hidden state h_T
    out_ref[...] = h_final.astype(out_ref.dtype)


def question_embedding_forward(x_btd, w_ih, w_hh, b_ih, b_hh):
    """x_btd: (B, T, in_dim) float32  ->  (B, num_hid) float32."""
    B, T, in_dim = x_btd.shape
    H = w_hh.shape[-1]

    # Time-major, then flatten (T, B) so the whole input projection is one matmul.
    x_2d = jnp.transpose(x_btd, (1, 0, 2)).reshape(T * B, in_dim)

    # Fuse the three gates into one matmul per operand: column blocks [r | z | n].
    wih_cat = jnp.concatenate([w_ih[0], w_ih[1], w_ih[2]], axis=-1)   # (in_dim, 3H)
    whh_cat = jnp.concatenate([w_hh[0], w_hh[1], w_hh[2]], axis=-1)   # (H, 3H)
    # Fold biases: r/z input+hidden biases sum up-front; b_in goes with x-proj;
    # b_hn must remain separate (it is multiplied by r inside the n-gate).
    b_x = jnp.concatenate([b_ih[0] + b_hh[0], b_ih[1] + b_hh[1], b_ih[2]], axis=-1)  # (1, 3H)
    b_hn = b_hh[2]                                                                    # (1, H)

    vmem = pl.BlockSpec(memory_space=pltpu.MemorySpace.VMEM)
    return pl.pallas_call(
        _gru_kernel,
        out_shape=jax.ShapeDtypeStruct((B, H), jnp.float32),
        in_specs=[vmem, vmem, vmem, vmem, vmem],
        out_specs=vmem,
        scratch_shapes=[pltpu.VMEM((T * B, 3 * H), jnp.float32)],
    )(x_2d, wih_cat, whh_cat, b_x, b_hn)


def _gru_reference(x_btd, w_ih, w_hh, b_ih, b_hh):
    """Pure-JAX reference (lax.scan) of the same GRU, for correctness check."""
    B = x_btd.shape[0]
    H = w_hh.shape[-1]
    x_tbd = jnp.transpose(x_btd, (1, 0, 2))

    def step(h, x_t):
        i_r = x_t @ w_ih[0] + b_ih[0]
        i_z = x_t @ w_ih[1] + b_ih[1]
        i_n = x_t @ w_ih[2] + b_ih[2]
        h_r = h @ w_hh[0] + b_hh[0]
        h_z = h @ w_hh[1] + b_hh[1]
        h_n = h @ w_hh[2] + b_hh[2]
        r = jax.nn.sigmoid(i_r + h_r)
        z = jax.nn.sigmoid(i_z + h_z)
        n = jnp.tanh(i_n + r * h_n)
        return (1.0 - z) * n + z * h, None

    h0 = jnp.zeros((B, H), jnp.float32)
    h_final, _ = jax.lax.scan(step, h0, x_tbd)
    return h_final


if __name__ == "__main__":
    # Module config: in_dim=32, num_hid=32, nlayers=1, bidirect=False, rnn_type='GRU'
    # TODO(synk): nlayers>1, bidirectional, and LSTM variants not implemented
    #             (single-layer, unidirectional GRU only; dropout is a no-op here).
    B, T, IN_DIM, H = 8, 8, 32, 32

    key = jax.random.PRNGKey(0)
    kx, k1, k2, k3, k4 = jax.random.split(key, 5)

    x = jax.random.normal(kx, (B, T, IN_DIM), dtype=jnp.float32)

    # PyTorch GRU init: U(-1/sqrt(H), 1/sqrt(H)); gate order (r, z, n), stored per-gate,
    # pre-transposed for right-multiplication.
    bound = 1.0 / jnp.sqrt(jnp.float32(H))
    w_ih = jax.random.uniform(k1, (3, IN_DIM, H), jnp.float32, -bound, bound)
    w_hh = jax.random.uniform(k2, (3, H, H), jnp.float32, -bound, bound)
    b_ih = jax.random.uniform(k3, (3, 1, H), jnp.float32, -bound, bound)
    b_hh = jax.random.uniform(k4, (3, 1, H), jnp.float32, -bound, bound)

    out = question_embedding_forward(x, w_ih, w_hh, b_ih, b_hh)
    out = jax.block_until_ready(out)

    ref = jax.block_until_ready(_gru_reference(x, w_ih, w_hh, b_ih, b_hh))
    assert out.shape == (B, H)
    assert jnp.allclose(out, ref, atol=1e-5, rtol=1e-5), "Pallas GRU mismatch vs reference"

    print("KERNEL_OK")
</pallas_src>

<mosaic_0001>
module attributes {stable_mosaic.version = 11 : i64} {
  func.func @_gru_kernel(%arg0: memref<64x32xf32, #tpu.memory_space<vmem>>, %arg1: memref<32x96xf32, #tpu.memory_space<vmem>>, %arg2: memref<32x96xf32, #tpu.memory_space<vmem>>, %arg3: memref<1x96xf32, #tpu.memory_space<vmem>>, %arg4: memref<1x32xf32, #tpu.memory_space<vmem>>, %arg5: memref<8x32xf32, #tpu.memory_space<vmem>>, %arg6: memref<64x96xf32, #tpu.memory_space<vmem>>) attributes {dimension_semantics = [], scalar_prefetch = 0 : i64, scratch_operands = 1 : i64, tpu.core_type = #tpu.core_type<tc>} {
    %c0 = arith.constant 0 : index
    %c0_0 = arith.constant 0 : index
    %0 = vector.load %arg0[%c0, %c0_0] : memref<64x32xf32, #tpu.memory_space<vmem>>, vector<64x32xf32>
    %c0_1 = arith.constant 0 : index
    %c0_2 = arith.constant 0 : index
    %1 = vector.load %arg1[%c0_1, %c0_2] : memref<32x96xf32, #tpu.memory_space<vmem>>, vector<32x96xf32>
    %cst = arith.constant dense<0.000000e+00> : vector<64x96xf32>
    %2 = tpu.matmul %0, %1, %cst {dimension_numbers = #tpu.dot_dimension_numbers<[1], [0], [0], [1], [0, 0, 1, 1], [], []>} : vector<64x32xf32>, vector<32x96xf32>, vector<64x96xf32> -> vector<64x96xf32>
    %c0_3 = arith.constant 0 : index
    %c0_4 = arith.constant 0 : index
    %3 = vector.load %arg3[%c0_3, %c0_4] : memref<1x96xf32, #tpu.memory_space<vmem>>, vector<1x96xf32>
    %4 = vector.broadcast %3 : vector<1x96xf32> to vector<64x96xf32>
    %5 = arith.addf %2, %4 : vector<64x96xf32>
    %c0_5 = arith.constant 0 : index
    %c0_6 = arith.constant 0 : index
    %6 = vector.load %arg6[%c0_5, %c0_6] : memref<64x96xf32, #tpu.memory_space<vmem>>, vector<64x96xf32>
    tpu.vector_store %arg6[%c0_5, %c0_6], %5 {strides = array<i32>} : memref<64x96xf32, #tpu.memory_space<vmem>>, vector<64x96xf32>,
    %c0_7 = arith.constant 0 : index
    %c0_8 = arith.constant 0 : index
    %7 = vector.load %arg2[%c0_7, %c0_8] : memref<32x96xf32, #tpu.memory_space<vmem>>, vector<32x96xf32>
    %c0_9 = arith.constant 0 : index
    %c0_10 = arith.constant 0 : index
    %8 = vector.load %arg4[%c0_9, %c0_10] : memref<1x32xf32, #tpu.memory_space<vmem>>, vector<1x32xf32>
    %cst_11 = arith.constant 0.000000e+00 : f32
    %9 = vector.broadcast %cst_11 : f32 to vector<8x32xf32>
    %c0_i32 = arith.constant 0 : i32
    %c8_i32 = arith.constant 8 : i32
    %10 = arith.muli %c0_i32, %c8_i32 : i32
    %11 = tpu.assume_multiple %10, 8 : i32
    %12 = arith.index_cast %11 : i32 to index
    %c0_12 = arith.constant 0 : index
    %13 = vector.load %arg6[%12, %c0_12] : memref<64x96xf32, #tpu.memory_space<vmem>>, vector<8x96xf32>
    %cst_13 = arith.constant dense<0.000000e+00> : vector<8x96xf32>
    %14 = tpu.matmul %9, %7, %cst_13 {dimension_numbers = #tpu.dot_dimension_numbers<[1], [0], [0], [1], [0, 0, 1, 1], [], []>} : vector<8x32xf32>, vector<32x96xf32>, vector<8x96xf32> -> vector<8x96xf32>
    %15 = vector.extract_strided_slice %13 {offsets = [0, 0], sizes = [8, 32], strides = [1, 1]} : vector<8x96xf32> to vector<8x32xf32>
    %16 = vector.extract_strided_slice %14 {offsets = [0, 0], sizes = [8, 32], strides = [1, 1]} : vector<8x96xf32> to vector<8x32xf32>
    %17 = arith.addf %15, %16 : vector<8x32xf32>
    %18 = arith.negf %17 : vector<8x32xf32>
    %19 = math.exp %18 : vector<8x32xf32>
    %cst_14 = arith.constant 1.000000e+00 : f32
    %20 = vector.broadcast %cst_14 : f32 to vector<8x32xf32>
    %21 = arith.addf %20, %19 : vector<8x32xf32>
    %22 = arith.divf %20, %21 : vector<8x32xf32>
    %23 = vector.extract_strided_slice %13 {offsets = [0, 32], sizes = [8, 32], strides = [1, 1]} : vector<8x96xf32> to vector<8x32xf32>
    %24 = vector.extract_strided_slice %14 {offsets = [0, 32], sizes = [8, 32], strides = [1, 1]} : vector<8x96xf32> to vector<8x32xf32>
    %25 = arith.addf %23, %24 : vector<8x32xf32>
    %26 = arith.negf %25 : vector<8x32xf32>
    %27 = math.exp %26 : vector<8x32xf32>
    %cst_15 = arith.constant 1.000000e+00 : f32
    %28 = vector.broadcast %cst_15 : f32 to vector<8x32xf32>
    %29 = arith.addf %28, %27 : vector<8x32xf32>
    %30 = arith.divf %28, %29 : vector<8x32xf32>
    %31 = vector.extract_strided_slice %13 {offsets = [0, 64], sizes = [8, 32], strides = [1, 1]} : vector<8x96xf32> to vector<8x32xf32>
    %32 = vector.extract_strided_slice %14 {offsets = [0, 64], sizes = [8, 32], strides = [1, 1]} : vector<8x96xf32> to vector<8x32xf32>
    %33 = vector.broadcast %8 : vector<1x32xf32> to vector<8x32xf32>
    %34 = arith.addf %32, %33 : vector<8x32xf32>
    %35 = arith.mulf %22, %34 : vector<8x32xf32>
    %36 = arith.addf %31, %35 : vector<8x32xf32>
    %37 = math.tanh %36 : vector<8x32xf32>
    %cst_16 = arith.constant 1.000000e+00 : f32
    %38 = vector.broadcast %cst_16 : f32 to vector<8x32xf32>
    %39 = arith.subf %38, %30 : vector<8x32xf32>
    %40 = arith.mulf %39, %37 : vector<8x32xf32>
    %41 = arith.mulf %30, %9 : vector<8x32xf32>
    %42 = arith.addf %40, %41 : vector<8x32xf32>
    %c1_i32 = arith.constant 1 : i32
    %c8_i32_17 = arith.constant 8 : i32
    %43 = arith.muli %c1_i32, %c8_i32_17 : i32
    %44 = tpu.assume_multiple %43, 8 : i32
    %45 = arith.index_cast %44 : i32 to index
    %c0_18 = arith.constant 0 : index
    %46 = vector.load %arg6[%45, %c0_18] : memref<64x96xf32, #tpu.memory_space<vmem>>, vector<8x96xf32>
    %cst_19 = arith.constant dense<0.000000e+00> : vector<8x96xf32>
    %47 = tpu.matmul %42, %7, %cst_19 {dimension_numbers = #tpu.dot_dimension_numbers<[1], [0], [0], [1], [0, 0, 1, 1], [], []>} : vector<8x32xf32>, vector<32x96xf32>, vector<8x96xf32> -> vector<8x96xf32>
    %48 = vector.extract_strided_slice %46 {offsets = [0, 0], sizes = [8, 32], strides = [1, 1]} : vector<8x96xf32> to vector<8x32xf32>
    %49 = vector.extract_strided_slice %47 {offsets = [0, 0], sizes = [8, 32], strides = [1, 1]} : vector<8x96xf32> to vector<8x32xf32>
    %50 = arith.addf %48, %49 : vector<8x32xf32>
    %51 = arith.negf %50 : vector<8x32xf32>
    %52 = math.exp %51 : vector<8x32xf32>
    %cst_20 = arith.constant 1.000000e+00 : f32
    %53 = vector.broadcast %cst_20 : f32 to vector<8x32xf32>
    %54 = arith.addf %53, %52 : vector<8x32xf32>
    %55 = arith.divf %53, %54 : vector<8x32xf32>
    %56 = vector.extract_strided_slice %46 {offsets = [0, 32], sizes = [8, 32], strides = [1, 1]} : vector<8x96xf32> to vector<8x32xf32>
    %57 = vector.extract_strided_slice %47 {offsets = [0, 32], sizes = [8, 32], strides = [1, 1]} : vector<8x96xf32> to vector<8x32xf32>
    %58 = arith.addf %56, %57 : vector<8x32xf32>
    %59 = arith.negf %58 : vector<8x32xf32>
    %60 = math.exp %59 : vector<8x32xf32>
    %cst_21 = arith.constant 1.000000e+00 : f32
    %61 = vector.broadcast %cst_21 : f32 to vector<8x32xf32>
    %62 = arith.addf %61, %60 : vector<8x32xf32>
    %63 = arith.divf %61, %62 : vector<8x32xf32>
    %64 = vector.extract_strided_slice %46 {offsets = [0, 64], sizes = [8, 32], strides = [1, 1]} : vector<8x96xf32> to vector<8x32xf32>
    %65 = vector.extract_strided_slice %47 {offsets = [0, 64], sizes = [8, 32], strides = [1, 1]} : vector<8x96xf32> to vector<8x32xf32>
    %66 = vector.broadcast %8 : vector<1x32xf32> to vector<8x32xf32>
    %67 = arith.addf %65, %66 : vector<8x32xf32>
    %68 = arith.mulf %55, %67 : vector<8x32xf32>
    %69 = arith.addf %64, %68 : vector<8x32xf32>
    %70 = math.tanh %69 : vector<8x32xf32>
    %cst_22 = arith.constant 1.000000e+00 : f32
    %71 = vector.broadcast %cst_22 : f32 to vector<8x32xf32>
    %72 = arith.subf %71, %63 : vector<8x32xf32>
    %73 = arith.mulf %72, %70 : vector<8x32xf32>
    %74 = arith.mulf %63, %42 : vector<8x32xf32>
    %75 = arith.addf %73, %74 : vector<8x32xf32>
    %c2_i32 = arith.constant 2 : i32
    %c8_i32_23 = arith.constant 8 : i32
    %76 = arith.muli %c2_i32, %c8_i32_23 : i32
    %77 = tpu.assume_multiple %76, 8 : i32
    %78 = arith.index_cast %77 : i32 to index
    %c0_24 = arith.constant 0 : index
    %79 = vector.load %arg6[%78, %c0_24] : memref<64x96xf32, #tpu.memory_space<vmem>>, vector<8x96xf32>
    %cst_25 = arith.constant dense<0.000000e+00> : vector<8x96xf32>
    %80 = tpu.matmul %75, %7, %cst_25 {dimension_numbers = #tpu.dot_dimension_numbers<[1], [0], [0], [1], [0, 0, 1, 1], [], []>} : vector<8x32xf32>, vector<32x96xf32>, vector<8x96xf32> -> vector<8x96xf32>
    %81 = vector.extract_strided_slice %79 {offsets = [0, 0], sizes = [8, 32], strides = [1, 1]} : vector<8x96xf32> to vector<8x32xf32>
    %82 = vector.extract_strided_slice %80 {offsets = [0, 0], sizes = [8, 32], strides = [1, 1]} : vector<8x96xf32> to vector<8x32xf32>
    %83 = arith.addf %81, %82 : vector<8x32xf32>
    %84 = arith.negf %83 : vector<8x32xf32>
    %85 = math.exp %84 : vector<8x32xf32>
    %cst_26 = arith.constant 1.000000e+00 : f32
    %86 = vector.broadcast %cst_26 : f32 to vector<8x32xf32>
    %87 = arith.addf %86, %85 : vector<8x32xf32>
    %88 = arith.divf %86, %87 : vector<8x32xf32>
    %89 = vector.extract_strided_slice %79 {offsets = [0, 32], sizes = [8, 32], strides = [1, 1]} : vector<8x96xf32> to vector<8x32xf32>
    %90 = vector.extract_strided_slice %80 {offsets = [0, 32], sizes = [8, 32], strides = [1, 1]} : vector<8x96xf32> to vector<8x32xf32>
    %91 = arith.addf %89, %90 : vector<8x32xf32>
    %92 = arith.negf %91 : vector<8x32xf32>
    %93 = math.exp %92 : vector<8x32xf32>
    %cst_27 = arith.constant 1.000000e+00 : f32
    %94 = vector.broadcast %cst_27 : f32 to vector<8x32xf32>
    %95 = arith.addf %94, %93 : vector<8x32xf32>
    %96 = arith.divf %94, %95 : vector<8x32xf32>
    %97 = vector.extract_strided_slice %79 {offsets = [0, 64], sizes = [8, 32], strides = [1, 1]} : vector<8x96xf32> to vector<8x32xf32>
    %98 = vector.extract_strided_slice %80 {offsets = [0, 64], sizes = [8, 32], strides = [1, 1]} : vector<8x96xf32> to vector<8x32xf32>
    %99 = vector.broadcast %8 : vector<1x32xf32> to vector<8x32xf32>
    %100 = arith.addf %98, %99 : vector<8x32xf32>
    %101 = arith.mulf %88, %100 : vector<8x32xf32>
    %102 = arith.addf %97, %101 : vector<8x32xf32>
    %103 = math.tanh %102 : vector<8x32xf32>
    %cst_28 = arith.constant 1.000000e+00 : f32
    %104 = vector.broadcast %cst_28 : f32 to vector<8x32xf32>
    %105 = arith.subf %104, %96 : vector<8x32xf32>
    %106 = arith.mulf %105, %103 : vector<8x32xf32>
    %107 = arith.mulf %96, %75 : vector<8x32xf32>
    %108 = arith.addf %106, %107 : vector<8x32xf32>
    %c3_i32 = arith.constant 3 : i32
    %c8_i32_29 = arith.constant 8 : i32
    %109 = arith.muli %c3_i32, %c8_i32_29 : i32
    %110 = tpu.assume_multiple %109, 8 : i32
    %111 = arith.index_cast %110 : i32 to index
    %c0_30 = arith.constant 0 : index
    %112 = vector.load %arg6[%111, %c0_30] : memref<64x96xf32, #tpu.memory_space<vmem>>, vector<8x96xf32>
    %cst_31 = arith.constant dense<0.000000e+00> : vector<8x96xf32>
    %113 = tpu.matmul %108, %7, %cst_31 {dimension_numbers = #tpu.dot_dimension_numbers<[1], [0], [0], [1], [0, 0, 1, 1], [], []>} : vector<8x32xf32>, vector<32x96xf32>, vector<8x96xf32> -> vector<8x96xf32>
    %114 = vector.extract_strided_slice %112 {offsets = [0, 0], sizes = [8, 32], strides = [1, 1]} : vector<8x96xf32> to vector<8x32xf32>
    %115 = vector.extract_strided_slice %113 {offsets = [0, 0], sizes = [8, 32], strides = [1, 1]} : vector<8x96xf32> to vector<8x32xf32>
    %116 = arith.addf %114, %115 : vector<8x32xf32>
    %117 = arith.negf %116 : vector<8x32xf32>
    %118 = math.exp %117 : vector<8x32xf32>
    %cst_32 = arith.constant 1.000000e+00 : f32
    %119 = vector.broadcast %cst_32 : f32 to vector<8x32xf32>
    %120 = arith.addf %119, %118 : vector<8x32xf32>
    %121 = arith.divf %119, %120 : vector<8x32xf32>
    %122 = vector.extract_strided_slice %112 {offsets = [0, 32], sizes = [8, 32], strides = [1, 1]} : vector<8x96xf32> to vector<8x32xf32>
    %123 = vector.extract_strided_slice %113 {offsets = [0, 32], sizes = [8, 32], strides = [1, 1]} : vector<8x96xf32> to vector<8x32xf32>
    %124 = arith.addf %122, %123 : vector<8x32xf32>
    %125 = arith.negf %124 : vector<8x32xf32>
    %126 = math.exp %125 : vector<8x32xf32>
    %cst_33 = arith.constant 1.000000e+00 : f32
    %127 = vector.broadcast %cst_33 : f32 to vector<8x32xf32>
    %128 = arith.addf %127, %126 : vector<8x32xf32>
    %129 = arith.divf %127, %128 : vector<8x32xf32>
    %130 = vector.extract_strided_slice %112 {offsets = [0, 64], sizes = [8, 32], strides = [1, 1]} : vector<8x96xf32> to vector<8x32xf32>
    %131 = vector.extract_strided_slice %113 {offsets = [0, 64], sizes = [8, 32], strides = [1, 1]} : vector<8x96xf32> to vector<8x32xf32>
    %132 = vector.broadcast %8 : vector<1x32xf32> to vector<8x32xf32>
    %133 = arith.addf %131, %132 : vector<8x32xf32>
    %134 = arith.mulf %121, %133 : vector<8x32xf32>
    %135 = arith.addf %130, %134 : vector<8x32xf32>
    %136 = math.tanh %135 : vector<8x32xf32>
    %cst_34 = arith.constant 1.000000e+00 : f32
    %137 = vector.broadcast %cst_34 : f32 to vector<8x32xf32>
    %138 = arith.subf %137, %129 : vector<8x32xf32>
    %139 = arith.mulf %138, %136 : vector<8x32xf32>
    %140 = arith.mulf %129, %108 : vector<8x32xf32>
    %141 = arith.addf %139, %140 : vector<8x32xf32>
    %c4_i32 = arith.constant 4 : i32
    %c8_i32_35 = arith.constant 8 : i32
    %142 = arith.muli %c4_i32, %c8_i32_35 : i32
    %143 = tpu.assume_multiple %142, 8 : i32
    %144 = arith.index_cast %143 : i32 to index
    %c0_36 = arith.constant 0 : index
    %145 = vector.load %arg6[%144, %c0_36] : memref<64x96xf32, #tpu.memory_space<vmem>>, vector<8x96xf32>
    %cst_37 = arith.constant dense<0.000000e+00> : vector<8x96xf32>
    %146 = tpu.matmul %141, %7, %cst_37 {dimension_numbers = #tpu.dot_dimension_numbers<[1], [0], [0], [1], [0, 0, 1, 1], [], []>} : vector<8x32xf32>, vector<32x96xf32>, vector<8x96xf32> -> vector<8x96xf32>
    %147 = vector.extract_strided_slice %145 {offsets = [0, 0], sizes = [8, 32], strides = [1, 1]} : vector<8x96xf32> to vector<8x32xf32>
    %148 = vector.extract_strided_slice %146 {offsets = [0, 0], sizes = [8, 32], strides = [1, 1]} : vector<8x96xf32> to vector<8x32xf32>
    %149 = arith.addf %147, %148 : vector<8x32xf32>
    %150 = arith.negf %149 : vector<8x32xf32>
    %151 = math.exp %150 : vector<8x32xf32>
    %cst_38 = arith.constant 1.000000e+00 : f32
    %152 = vector.broadcast %cst_38 : f32 to vector<8x32xf32>
    %153 = arith.addf %152, %151 : vector<8x32xf32>
    %154 = arith.divf %152, %153 : vector<8x32xf32>
    %155 = vector.extract_strided_slice %145 {offsets = [0, 32], sizes = [8, 32], strides = [1, 1]} : vector<8x96xf32> to vector<8x32xf32>
    %156 = vector.extract_strided_slice %146 {offsets = [0, 32], sizes = [8, 32], strides = [1, 1]} : vector<8x96xf32> to vector<8x32xf32>
    %157 = arith.addf %155, %156 : vector<8x32xf32>
    %158 = arith.negf %157 : vector<8x32xf32>
    %159 = math.exp %158 : vector<8x32xf32>
    %cst_39 = arith.constant 1.000000e+00 : f32
    %160 = vector.broadcast %cst_39 : f32 to vector<8x32xf32>
    %161 = arith.addf %160, %159 : vector<8x32xf32>
    %162 = arith.divf %160, %161 : vector<8x32xf32>
    %163 = vector.extract_strided_slice %145 {offsets = [0, 64], sizes = [8, 32], strides = [1, 1]} : vector<8x96xf32> to vector<8x32xf32>
    %164 = vector.extract_strided_slice %146 {offsets = [0, 64], sizes = [8, 32], strides = [1, 1]} : vector<8x96xf32> to vector<8x32xf32>
    %165 = vector.broadcast %8 : vector<1x32xf32> to vector<8x32xf32>
    %166 = arith.addf %164, %165 : vector<8x32xf32>
    %167 = arith.mulf %154, %166 : vector<8x32xf32>
    %168 = arith.addf %163, %167 : vector<8x32xf32>
    %169 = math.tanh %168 : vector<8x32xf32>
    %cst_40 = arith.constant 1.000000e+00 : f32
    %170 = vector.broadcast %cst_40 : f32 to vector<8x32xf32>
    %171 = arith.subf %170, %162 : vector<8x32xf32>
    %172 = arith.mulf %171, %169 : vector<8x32xf32>
    %173 = arith.mulf %162, %141 : vector<8x32xf32>
    %174 = arith.addf %172, %173 : vector<8x32xf32>
    %c5_i32 = arith.constant 5 : i32
    %c8_i32_41 = arith.constant 8 : i32
    %175 = arith.muli %c5_i32, %c8_i32_41 : i32
    %176 = tpu.assume_multiple %175, 8 : i32
    %177 = arith.index_cast %176 : i32 to index
    %c0_42 = arith.constant 0 : index
    %178 = vector.load %arg6[%177, %c0_42] : memref<64x96xf32, #tpu.memory_space<vmem>>, vector<8x96xf32>
    %cst_43 = arith.constant dense<0.000000e+00> : vector<8x96xf32>
    %179 = tpu.matmul %174, %7, %cst_43 {dimension_numbers = #tpu.dot_dimension_numbers<[1], [0], [0], [1], [0, 0, 1, 1], [], []>} : vector<8x32xf32>, vector<32x96xf32>, vector<8x96xf32> -> vector<8x96xf32>
    %180 = vector.extract_strided_slice %178 {offsets = [0, 0], sizes = [8, 32], strides = [1, 1]} : vector<8x96xf32> to vector<8x32xf32>
    %181 = vector.extract_strided_slice %179 {offsets = [0, 0], sizes = [8, 32], strides = [1, 1]} : vector<8x96xf32> to vector<8x32xf32>
    %182 = arith.addf %180, %181 : vector<8x32xf32>
    %183 = arith.negf %182 : vector<8x32xf32>
    %184 = math.exp %183 : vector<8x32xf32>
    %cst_44 = arith.constant 1.000000e+00 : f32
    %185 = vector.broadcast %cst_44 : f32 to vector<8x32xf32>
    %186 = arith.addf %185, %184 : vector<8x32xf32>
    %187 = arith.divf %185, %186 : vector<8x32xf32>
    %188 = vector.extract_strided_slice %178 {offsets = [0, 32], sizes = [8, 32], strides = [1, 1]} : vector<8x96xf32> to vector<8x32xf32>
    %189 = vector.extract_strided_slice %179 {offsets = [0, 32], sizes = [8, 32], strides = [1, 1]} : vector<8x96xf32> to vector<8x32xf32>
    %190 = arith.addf %188, %189 : vector<8x32xf32>
    %191 = arith.negf %190 : vector<8x32xf32>
    %192 = math.exp %191 : vector<8x32xf32>
    %cst_45 = arith.constant 1.000000e+00 : f32
    %193 = vector.broadcast %cst_45 : f32 to vector<8x32xf32>
    %194 = arith.addf %193, %192 : vector<8x32xf32>
    %195 = arith.divf %193, %194 : vector<8x32xf32>
    %196 = vector.extract_strided_slice %178 {offsets = [0, 64], sizes = [8, 32], strides = [1, 1]} : vector<8x96xf32> to vector<8x32xf32>
    %197 = vector.extract_strided_slice %179 {offsets = [0, 64], sizes = [8, 32], strides = [1, 1]} : vector<8x96xf32> to vector<8x32xf32>
    %198 = vector.broadcast %8 : vector<1x32xf32> to vector<8x32xf32>
    %199 = arith.addf %197, %198 : vector<8x32xf32>
    %200 = arith.mulf %187, %199 : vector<8x32xf32>
    %201 = arith.addf %196, %200 : vector<8x32xf32>
    %202 = math.tanh %201 : vector<8x32xf32>
    %cst_46 = arith.constant 1.000000e+00 : f32
    %203 = vector.broadcast %cst_46 : f32 to vector<8x32xf32>
    %204 = arith.subf %203, %195 : vector<8x32xf32>
    %205 = arith.mulf %204, %202 : vector<8x32xf32>
    %206 = arith.mulf %195, %174 : vector<8x32xf32>
    %207 = arith.addf %205, %206 : vector<8x32xf32>
    %c6_i32 = arith.constant 6 : i32
    %c8_i32_47 = arith.constant 8 : i32
    %208 = arith.muli %c6_i32, %c8_i32_47 : i32
    %209 = tpu.assume_multiple %208, 8 : i32
    %210 = arith.index_cast %209 : i32 to index
    %c0_48 = arith.constant 0 : index
    %211 = vector.load %arg6[%210, %c0_48] : memref<64x96xf32, #tpu.memory_space<vmem>>, vector<8x96xf32>
    %cst_49 = arith.constant dense<0.000000e+00> : vector<8x96xf32>
    %212 = tpu.matmul %207, %7, %cst_49 {dimension_numbers = #tpu.dot_dimension_numbers<[1], [0], [0], [1], [0, 0, 1, 1], [], []>} : vector<8x32xf32>, vector<32x96xf32>, vector<8x96xf32> -> vector<8x96xf32>
    %213 = vector.extract_strided_slice %211 {offsets = [0, 0], sizes = [8, 32], strides = [1, 1]} : vector<8x96xf32> to vector<8x32xf32>
    %214 = vector.extract_strided_slice %212 {offsets = [0, 0], sizes = [8, 32], strides = [1, 1]} : vector<8x96xf32> to vector<8x32xf32>
    %215 = arith.addf %213, %214 : vector<8x32xf32>
    %216 = arith.negf %215 : vector<8x32xf32>
    %217 = math.exp %216 : vector<8x32xf32>
    %cst_50 = arith.constant 1.000000e+00 : f32
    %218 = vector.broadcast %cst_50 : f32 to vector<8x32xf32>
    %219 = arith.addf %218, %217 : vector<8x32xf32>
    %220 = arith.divf %218, %219 : vector<8x32xf32>
    %221 = vector.extract_strided_slice %211 {offsets = [0, 32], sizes = [8, 32], strides = [1, 1]} : vector<8x96xf32> to vector<8x32xf32>
    %222 = vector.extract_strided_slice %212 {offsets = [0, 32], sizes = [8, 32], strides = [1, 1]} : vector<8x96xf32> to vector<8x32xf32>
    %223 = arith.addf %221, %222 : vector<8x32xf32>
    %224 = arith.negf %223 : vector<8x32xf32>
    %225 = math.exp %224 : vector<8x32xf32>
    %cst_51 = arith.constant 1.000000e+00 : f32
    %226 = vector.broadcast %cst_51 : f32 to vector<8x32xf32>
    %227 = arith.addf %226, %225 : vector<8x32xf32>
    %228 = arith.divf %226, %227 : vector<8x32xf32>
    %229 = vector.extract_strided_slice %211 {offsets = [0, 64], sizes = [8, 32], strides = [1, 1]} : vector<8x96xf32> to vector<8x32xf32>
    %230 = vector.extract_strided_slice %212 {offsets = [0, 64], sizes = [8, 32], strides = [1, 1]} : vector<8x96xf32> to vector<8x32xf32>
    %231 = vector.broadcast %8 : vector<1x32xf32> to vector<8x32xf32>
    %232 = arith.addf %230, %231 : vector<8x32xf32>
    %233 = arith.mulf %220, %232 : vector<8x32xf32>
    %234 = arith.addf %229, %233 : vector<8x32xf32>
    %235 = math.tanh %234 : vector<8x32xf32>
    %cst_52 = arith.constant 1.000000e+00 : f32
    %236 = vector.broadcast %cst_52 : f32 to vector<8x32xf32>
    %237 = arith.subf %236, %228 : vector<8x32xf32>
    %238 = arith.mulf %237, %235 : vector<8x32xf32>
    %239 = arith.mulf %228, %207 : vector<8x32xf32>
    %240 = arith.addf %238, %239 : vector<8x32xf32>
    %c7_i32 = arith.constant 7 : i32
    %c8_i32_53 = arith.constant 8 : i32
    %241 = arith.muli %c7_i32, %c8_i32_53 : i32
    %242 = tpu.assume_multiple %241, 8 : i32
    %243 = arith.index_cast %242 : i32 to index
    %c0_54 = arith.constant 0 : index
    %244 = vector.load %arg6[%243, %c0_54] : memref<64x96xf32, #tpu.memory_space<vmem>>, vector<8x96xf32>
    %cst_55 = arith.constant dense<0.000000e+00> : vector<8x96xf32>
    %245 = tpu.matmul %240, %7, %cst_55 {dimension_numbers = #tpu.dot_dimension_numbers<[1], [0], [0], [1], [0, 0, 1, 1], [], []>} : vector<8x32xf32>, vector<32x96xf32>, vector<8x96xf32> -> vector<8x96xf32>
    %246 = vector.extract_strided_slice %244 {offsets = [0, 0], sizes = [8, 32], strides = [1, 1]} : vector<8x96xf32> to vector<8x32xf32>
    %247 = vector.extract_strided_slice %245 {offsets = [0, 0], sizes = [8, 32], strides = [1, 1]} : vector<8x96xf32> to vector<8x32xf32>
    %248 = arith.addf %246, %247 : vector<8x32xf32>
    %249 = arith.negf %248 : vector<8x32xf32>
    %250 = math.exp %249 : vector<8x32xf32>
    %cst_56 = arith.constant 1.000000e+00 : f32
    %251 = vector.broadcast %cst_56 : f32 to vector<8x32xf32>
    %252 = arith.addf %251, %250 : vector<8x32xf32>
    %253 = arith.divf %251, %252 : vector<8x32xf32>
    %254 = vector.extract_strided_slice %244 {offsets = [0, 32], sizes = [8, 32], strides = [1, 1]} : vector<8x96xf32> to vector<8x32xf32>
    %255 = vector.extract_strided_slice %245 {offsets = [0, 32], sizes = [8, 32], strides = [1, 1]} : vector<8x96xf32> to vector<8x32xf32>
    %256 = arith.addf %254, %255 : vector<8x32xf32>
    %257 = arith.negf %256 : vector<8x32xf32>
    %258 = math.exp %257 : vector<8x32xf32>
    %cst_57 = arith.constant 1.000000e+00 : f32
    %259 = vector.broadcast %cst_57 : f32 to vector<8x32xf32>
    %260 = arith.addf %259, %258 : vector<8x32xf32>
    %261 = arith.divf %259, %260 : vector<8x32xf32>
    %262 = vector.extract_strided_slice %244 {offsets = [0, 64], sizes = [8, 32], strides = [1, 1]} : vector<8x96xf32> to vector<8x32xf32>
    %263 = vector.extract_strided_slice %245 {offsets = [0, 64], sizes = [8, 32], strides = [1, 1]} : vector<8x96xf32> to vector<8x32xf32>
    %264 = vector.broadcast %8 : vector<1x32xf32> to vector<8x32xf32>
    %265 = arith.addf %263, %264 : vector<8x32xf32>
    %266 = arith.mulf %253, %265 : vector<8x32xf32>
    %267 = arith.addf %262, %266 : vector<8x32xf32>
    %268 = math.tanh %267 : vector<8x32xf32>
    %cst_58 = arith.constant 1.000000e+00 : f32
    %269 = vector.broadcast %cst_58 : f32 to vector<8x32xf32>
    %270 = arith.subf %269, %261 : vector<8x32xf32>
    %271 = arith.mulf %270, %268 : vector<8x32xf32>
    %272 = arith.mulf %261, %240 : vector<8x32xf32>
    %273 = arith.addf %271, %272 : vector<8x32xf32>
    %c8_i32_59 = arith.constant 8 : i32
    %c0_60 = arith.constant 0 : index
    %c0_61 = arith.constant 0 : index
    %274 = vector.load %arg5[%c0_60, %c0_61] : memref<8x32xf32, #tpu.memory_space<vmem>>, vector<8x32xf32>
    tpu.vector_store %arg5[%c0_60, %c0_61], %273 {strides = array<i32>} : memref<8x32xf32, #tpu.memory_space<vmem>>, vector<8x32xf32>,
    return
  }
}

</mosaic_0001>

<bundles_post_ra>
// kernel: tpu_custom_call.1
= control target key start
LH: loop header
LB: loop body
LE: loop exit
PB: predicated region body
PF: predicated region fallthrough
CT: control target
= control target key end

     0   :  { %v1359_v3 = vmov 0.0|0.0   ;;  %vm1360_vm0 = vmmov 0   ;;  %v1361_v8 = vmov 0.0   ;;  %vm40_vm1 = vcmask 261120   ;;  %s1591_s0 = inlined_call_operand.vmem [shape: f32[64,32], index: 0, kind: input, shape index: {}]   ;;  %s1592_s1 = inlined_call_operand.vmem [shape: f32[32,96], index: 1, kind: input, shape index: {}]   ;;  %s1593_s2 = inlined_call_operand.vmem [shape: f32[32,96], index: 2, kind: input, shape index: {}]   ;;  %s1594_s3 = inlined_call_operand.vmem [shape: f32[1,96], index: 3, kind: input, shape index: {}]   ;;  %s1595_s4 = inlined_call_operand.vmem [shape: f32[1,32], index: 4, kind: input, shape index: {}]   ;;  %s1596_s5 = inlined_call_operand.hbm [shape: f32[8,32], index: 5, kind: output, shape index: {}]  }
   0x1   :  { %v29_v0 = vld [vmem:[%s1592_s1] sm:$0xff]  ;;  %v30_v1 = vld [vmem:[%s1592_s1 + $0x8] sm:$0xff]  ;;  %1233 = vmatprep.subr.bf16.mxu1 %v1359_v3  ;;  %v31_v6 = vld [vmem:[%s1592_s1 + $0x10] sm:$0xff]  ;;  %1145 = vmatprep.mubr.msk.f32.mxu1 %vm1360_vm0, %v1361_v8 }
   0x2   :  { %v179_v2 = vld [vmem:[%s1593_s2] sm:$0xff]  ;;  %v1225_v4 = vpack.c.bf16 %v30_v1, %v29_v0  ;;  %v180_v5 = vld [vmem:[%s1593_s2 + $0x8] sm:$0xff]  ;;  %v32_v7 = vld [vmem:[%s1592_s1 + $0x18] sm:$0xff] }
   0x3   :  { %v1416_v9 = vpack.c.bf16 %v180_v5, %v179_v2  ;;  %v1229_v10 = vpack.c.bf16 %v32_v7, %v31_v6  ;;  %v181_v11 = vld [vmem:[%s1593_s2 + $0x10] sm:$0xff]  ;;  %v182_v12 = vld [vmem:[%s1593_s2 + $0x18] sm:$0xff]  ;;  %v21_v13 = vld [vmem:[%s1591_s0] sm:$0xff] }
   0x4   :  { %1226 = vmatprep.subr.bf16.mxu0 %v1225_v4  ;;  %1125 = vmatprep.mubr.msk.f32.mxu0 %vm40_vm1, %v21_v13  ;;  %v1050_v14 = vld [vmem:[%s1595_s4] ss:$0 sm:$0xff] }
   0x5   :  { %10 = vsyncpa [#allocation4], 0  ;;  %1235 = vmatpush3.bf16.msra.mxu1 %v1416_v9  ;;  %1228 = vmatpush3.bf16.msra.mxu0 %v1225_v4  ;;  %v1432_v15 = vpack.c.bf16 %v182_v12, %v181_v11  ;;  %s1362_s2 = smov 64   ;;  %v22_v16 = vld [vmem:[%s1591_s0 + $0x8] sm:$0xff]  ;;  %v1459_v18 = vld [vmem:[%s1594_s3] ss:$0 sm:$0xff] }
   0x6   :  { %1236 = vmatprep.subr.bf16.mxu1 %v1359_v3  ;;  %1230 = vmatprep.subr.bf16.mxu0 %v1229_v10  ;;  %vm170_vm2 = vcmask 785408   ;;  %s1363_s3 = smov 96   ;;  %v23_v56 = vld [vmem:[%s1591_s0 + $0x10] sm:$0xff]  ;;  %v24_v57 = vld [vmem:[%s1591_s0 + $0x18] sm:$0xff]  ;;  %v25_v58 = vld [vmem:[%s1591_s0 + $0x20] sm:$0xff] }
   0x7   :  { %270 = vrot.lane.b32.xlu0 %v1050_v14, %s1362_s2  ;;  %v26_v59 = vld [vmem:[%s1591_s0 + $0x28] sm:$0xff]  ;;  %v27_v60 = vld [vmem:[%s1591_s0 + $0x30] sm:$0xff]  ;;  %v28_v61 = vld [vmem:[%s1591_s0 + $0x38] sm:$0xff]  ;;  %s1364_s0 = smov [#allocation3]  }
   0x8   :  { %s1032_s27 = sshll.u32 %s1364_s0, 4  ;;  %s1033_s27 = int_to_ptr.vmem [resolvable:$true] %s1032_s27 }
   0x9   :  { %1238 = vmatpush3.bf16.msra.mxu1 %v1432_v15  ;;  %1232 = vmatpush3.bf16.msra.mxu0 %v1229_v10  ;;  %s1335_s28 = scalar_lea.vmem %s1033_s27, 128  ;;  %p1340_p1 = scmp.lt.s32.totalorder %s1033_s27, %s1033_s27 }
   0xa   :  { %1239 = vmatprep.subr.bf16.mxu1 %v1359_v3  ;;  %1245 = vmatprep.subr.bf16.mxu0 %v1359_v3  ;;  %p1336_p0 = scmp.ne.s32.totalorder %s1033_s27, %s1335_s28  ;;  %p1341_p2 = scmp.lt.s32.totalorder %s1335_s28, %s1335_s28 }
   0xc   :  { %1146 = vmatmul.mubr.f32.vlgmr.msra.gmra.mrb[0].mxu1 %v1361_v8  ;;  %1126 = vmatmul.mubr.msk.f32.vlgmr.msra.gmra.mrb[0].mxu0 %vm40_vm1, %v22_v16  ;;  %p1342_p3 = por %p1341_p2, %p1340_p1 }
   0xd   :  { %1241 = vmatpush3.bf16.msra.mxu1 %v1416_v9  ;;  %1156 = vmatprep.mubr.msk.f32.mxu1 %vm1360_vm0, %v1361_v8 }
   0xe   :  { %1242 = vmatprep.subr.bf16.mxu1 %v1359_v3  ;;  %1247 = vmatpush3.bf16.msra.mxu0 %v1416_v9  ;;  %p1343_p4 = pnand %p1342_p3, %p1336_p0 }
   0xf   :  { %1248 = vmatprep.subr.bf16.mxu0 %v1359_v3  ;;  %1128 = vmatprep.mubr.msk.f32.mxu0 %vm40_vm1, %v23_v56 }
  0x10   :  { %1129 = vmatmul.mubr.msk.f32.gmra.mrb[2].mxu0 %vm40_vm1, %v24_v57 }
  0x11   :  { %1244 = vmatpush3.bf16.msra.mxu1 %v1432_v15  ;;  %1131 = vmatprep.mubr.msk.f32.mxu0 %vm40_vm1, %v25_v58 }
  0x12   :  { %1250 = vmatpush3.bf16.msra.mxu0 %v1432_v15  ;;  %1251 = vmatprep.subr.bf16.mxu1 %v1359_v3 }
  0x13   :  { %1257 = vmatprep.subr.bf16.mxu0 %v1359_v3 }
  0x14   :  { %1132 = vmatmul.mubr.msk.f32.gmra.mrb[4].mxu0 %vm40_vm1, %v26_v59 }
  0x15   :  { %1134 = vmatprep.mubr.msk.f32.mxu0 %vm40_vm1, %v27_v60 }
  0x18   :  { %1135 = vmatmul.mubr.msk.f32.gmra.mrb[6].mxu0 %vm40_vm1, %v28_v61 }
  0x19   :  { %1167 = vmatprep.mubr.msk.f32.mxu0 %vm1360_vm0, %v1361_v8 }
  0x79   :  { %v1454_v17 = vpop.permute.xlu0 %270 }
  0xdf   :  { %v254_v19 = vpop.f32.mrb[0].mxu1  ;;  %v1127_v20 = vpop.f32.mrb[0].mxu0 }
  0xe0   :  { %v273_v21 = vadd.f32 %v1454_v17, %v254_v19  ;;  %v137_v22 = vadd.f32 %v1127_v20, %v1459_v18  ;;  %v1147_v23 = vpop.f32.mrb[1].mxu1  ;;  %v131_v24 = vpop.f32.mrb[1].mxu0 }
  0xe1   :  { %v132_v25 = vadd.f32 %v1459_v18, %v131_v24 }
  0xe2   :  { %172 = vst.msk [vmem:[#allocation2 + $0x8] sm:$0xff] %vm170_vm2, %v137_v22  ;;  %275 = vrot.lane.b32.xlu0 %v273_v21, %s1362_s2 }
  0xe3   :  { %171 = vst.msk [vmem:[#allocation2] sm:$0xff] %vm170_vm2, %v132_v25  ;;  %v1130_v5 = vpop.f32.mrb[2].mxu0 }
  0xe4   :  { %v147_v6 = vadd.f32 %v1130_v5, %v1459_v18  ;;  %v141_v7 = vpop.f32.mrb[3].mxu0 }
  0xe5   :  { %v142_v10 = vadd.f32 %v1459_v18, %v141_v7 }
  0xe6   :  { %174 = vst.msk [vmem:[#allocation2 + $0x18] sm:$0xff] %vm170_vm2, %v147_v6 }
  0xe7   :  { %173 = vst.msk [vmem:[#allocation2 + $0x10] sm:$0xff] %vm170_vm2, %v142_v10  ;;  %v1133_v11 = vpop.f32.mrb[4].mxu0 }
  0xe8   :  { %v157_v12 = vadd.f32 %v1133_v11, %v1459_v18  ;;  %v151_v13 = vpop.f32.mrb[5].mxu0 }
  0xe9   :  { %v294_v46 = vld [vmem:[#allocation2 + $0x8] sm:$0xff]  ;;  %v152_v14 = vadd.f32 %v1459_v18, %v151_v13 }
  0xea   :  { %v184_v26 = vld [vmem:[#allocation2] sm:$0xff]  ;;  %176 = vst.msk [vmem:[#allocation2 + $0x28] sm:$0xff] %vm170_vm2, %v157_v12 }
  0xeb   :  { %v258_v27 = vadd.f32 %v254_v19, %v184_v26  ;;  %175 = vst.msk [vmem:[#allocation2 + $0x20] sm:$0xff] %vm170_vm2, %v152_v14  ;;  %v1136_v16 = vpop.f32.mrb[6].mxu0 }
  0xec   :  { %v167_v19 = vadd.f32 %v1136_v16, %v1459_v18  ;;  %v161_v20 = vpop.f32.mrb[7].mxu0 }
  0xed   :  { %v1049_v28 = vmul.f32 -1.442695, %v258_v27  ;;  %v162_v21 = vadd.f32 %v1459_v18, %v161_v20 }
  0xee   :  { %178 = vst.msk [vmem:[#allocation2 + $0x38] sm:$0xff] %vm170_vm2, %v167_v19  ;;  %v398_v25 = vld [vmem:[#allocation2 + $0x10] sm:$0xff] }
  0xef   :  { %1287 = vpow2.f32 %v1049_v28  ;;  %177 = vst.msk [vmem:[#allocation2 + $0x30] sm:$0xff] %vm170_vm2, %v162_v21 }
  0xf9   :  { %v1288_v29 = vpop.eup %1287 }
  0xfa   :  { %v262_v30 = vadd.f32 1.0, %v1288_v29 }
  0xfc   :  { %1289 = vrcp.f32 %v262_v30 }
 0x106   :  { %v1290_v31 = vpop.eup %1289 }
 0x107   :  { %v285_v37 = vsub.f32 1.0, %v1290_v31  ;;  %v291_v39 = vmul.f32 0.0, %v1290_v31 }
 0x154   :  { %v276_v32 = vpop.permute.xlu0 %275 }
 0x155   :  { %v278_v33 = vmul.f32 %v1290_v31, %v276_v32 }
 0x157   :  { %280 = vrot.lane.b32.xlu1 %v278_v33, %s1362_s2 }
 0x1c9   :  { %v281_v34 = vpop.permute.xlu1 %280 }
 0x1ca   :  { %v283_v35 = vadd.f32 %v281_v34, %v184_v26 }
 0x1cc   :  { %1291 = vtanh.f32 %v283_v35 }
 0x1d6   :  { %v1292_v36 = vpop.eup %1291 }
 0x1d7   :  { %287 = vrot.lane.b32.xlu1 %v1292_v36, %s1363_s3 }
 0x249   :  { %v288_v38 = vpop.permute.xlu1 %287 }
 0x24a   :  { %v290_v40 = vmul.f32 %v288_v38, %v285_v37 }
 0x24c   :  { %v292_v41 = vadd.f32 %v291_v39, %v290_v40 }
 0x24e   :  { %296 = vrot.lane.b32.xlu0 %v292_v41, %s1363_s3 }
 0x2c0   :  { %v297_v42 = vpop.permute.xlu0 %296 }
 0x2c1   :  { %1157 = vmatmul.mubr.msk.f32.vlgmr.msra.gmra.mrb[2].mxu1 %vm40_vm1, %v297_v42 }
 0x2c2   :  { %1253 = vmatpush3.bf16.msra.mxu1 %v1416_v9  ;;  %1178 = vmatprep.mubr.msk.f32.mxu1 %vm1360_vm0, %v1361_v8 }
 0x2c3   :  { %1254 = vmatprep.subr.bf16.mxu1 %v1359_v3 }
 0x2c6   :  { %1256 = vmatpush3.bf16.msra.mxu1 %v1432_v15 }
 0x2c7   :  { %1263 = vmatprep.subr.bf16.mxu1 %v1359_v3 }
 0x394   :  { %v366_v43 = vpop.f32.mrb[2].mxu1 }
 0x395   :  { %v377_v44 = vadd.f32 %v366_v43, %v1454_v17  ;;  %v1158_v45 = vpop.f32.mrb[3].mxu1  ;;  %v370_v47 = vadd.f32 %v366_v43, %v294_v46 }
 0x396   :  { %v502_v45 = vld [vmem:[#allocation2 + $0x18] sm:$0xff] }
 0x397   :  { %379 = vrot.lane.b32.xlu1 %v377_v44, %s1362_s2  ;;  %v1052_v48 = vmul.f32 -1.442695, %v370_v47 }
 0x399   :  { %1293 = vpow2.f32 %v1052_v48 }
 0x3a3   :  { %v1294_v49 = vpop.eup %1293 }
 0x3a4   :  { %v374_v50 = vadd.f32 1.0, %v1294_v49 }
 0x3a6   :  { %1295 = vrcp.f32 %v374_v50 }
 0x3b0   :  { %v1296_v51 = vpop.eup %1295 }
 0x3b1   :  { %v389_v63 = vsub.f32 1.0, %v1296_v51  ;;  %v395_v1 = vmul.f32 %v1296_v51, %v292_v41 }
 0x409   :  { %v380_v52 = vpop.permute.xlu1 %379 }
 0x40a   :  { %v382_v53 = vmul.f32 %v1296_v51, %v380_v52 }
 0x40c   :  { %384 = vrot.lane.b32.xlu0 %v382_v53, %s1362_s2 }
 0x47e   :  { %v385_v54 = vpop.permute.xlu0 %384 }
 0x47f   :  { %v387_v55 = vadd.f32 %v385_v54, %v294_v46 }
 0x481   :  { %1297 = vtanh.f32 %v387_v55 }
 0x48b   :  { %v1298_v62 = vpop.eup %1297 }
 0x48c   :  { %391 = vrot.lane.b32.xlu1 %v1298_v62, %s1363_s3 }
 0x4fe   :  { %v392_v0 = vpop.permute.xlu1 %391 }
 0x4ff   :  { %v394_v2 = vmul.f32 %v392_v0, %v389_v63 }
 0x501   :  { %v396_v4 = vadd.f32 %v395_v1, %v394_v2  ;;  %v606_v1 = vld [vmem:[#allocation2 + $0x20] sm:$0xff] }
 0x503   :  { %400 = vrot.lane.b32.xlu0 %v396_v4, %s1363_s3 }
 0x575   :  { %v401_v22 = vpop.permute.xlu0 %400 }
 0x576   :  { %1168 = vmatmul.mubr.msk.f32.vlgmr.msra.gmra.mrb[8].mxu0 %vm40_vm1, %v401_v22 }
 0x577   :  { %1259 = vmatpush3.bf16.msra.mxu0 %v1416_v9  ;;  %1189 = vmatprep.mubr.msk.f32.mxu0 %vm1360_vm0, %v1361_v8 }
 0x578   :  { %1260 = vmatprep.subr.bf16.mxu0 %v1359_v3 }
 0x57b   :  { %1262 = vmatpush3.bf16.msra.mxu0 %v1432_v15 }
 0x57c   :  { %1269 = vmatprep.subr.bf16.mxu0 %v1359_v3 }
 0x649   :  { %v470_v23 = vpop.f32.mrb[8].mxu0 }
 0x64a   :  { %v481_v18 = vadd.f32 %v470_v23, %v1454_v17  ;;  %v1169_v24 = vpop.f32.mrb[9].mxu0  ;;  %v474_v26 = vadd.f32 %v470_v23, %v398_v25 }
 0x64c   :  { %483 = vrot.lane.b32.xlu1 %v481_v18, %s1362_s2  ;;  %v1054_v27 = vmul.f32 -1.442695, %v474_v26  ;;  %v710_v26 = vld [vmem:[#allocation2 + $0x28] sm:$0xff] }
 0x64e   :  { %1299 = vpow2.f32 %v1054_v27 }
 0x658   :  { %v1300_v28 = vpop.eup %1299 }
 0x659   :  { %v478_v29 = vadd.f32 1.0, %v1300_v28 }
 0x65b   :  { %1301 = vrcp.f32 %v478_v29 }
 0x665   :  { %v1302_v30 = vpop.eup %1301 }
 0x666   :  { %v493_v36 = vsub.f32 1.0, %v1302_v30  ;;  %v499_v38 = vmul.f32 %v1302_v30, %v396_v4 }
 0x6be   :  { %v484_v31 = vpop.permute.xlu1 %483 }
 0x6bf   :  { %v486_v32 = vmul.f32 %v1302_v30, %v484_v31 }
 0x6c1   :  { %488 = vrot.lane.b32.xlu0 %v486_v32, %s1362_s2 }
 0x733   :  { %v489_v33 = vpop.permute.xlu0 %488 }
 0x734   :  { %v491_v34 = vadd.f32 %v489_v33, %v398_v25 }
 0x736   :  { %1303 = vtanh.f32 %v491_v34 }
 0x740   :  { %v1304_v35 = vpop.eup %1303 }
 0x741   :  { %495 = vrot.lane.b32.xlu1 %v1304_v35, %s1363_s3 }
 0x7b3   :  { %v496_v37 = vpop.permute.xlu1 %495 }
 0x7b4   :  { %v498_v39 = vmul.f32 %v496_v37, %v493_v36 }
 0x7b6   :  { %v500_v40 = vadd.f32 %v499_v38, %v498_v39 }
 0x7b8   :  { %504 = vrot.lane.b32.xlu0 %v500_v40, %s1363_s3 }
 0x82a   :  { %v505_v41 = vpop.permute.xlu0 %504 }
 0x82b   :  { %1179 = vmatmul.mubr.msk.f32.vlgmr.msra.gmra.mrb[4].mxu1 %vm40_vm1, %v505_v41 }
 0x82c   :  { %1265 = vmatpush3.bf16.msra.mxu1 %v1416_v9  ;;  %1200 = vmatprep.mubr.msk.f32.mxu1 %vm1360_vm0, %v1361_v8 }
 0x82d   :  { %1266 = vmatprep.subr.bf16.mxu1 %v1359_v3 }
 0x830   :  { %1268 = vmatpush3.bf16.msra.mxu1 %v1432_v15 }
 0x831   :  { %1275 = vmatprep.subr.bf16.mxu1 %v1359_v3 }
 0x8fe   :  { %v574_v42 = vpop.f32.mrb[4].mxu1 }
 0x8ff   :  { %v585_v43 = vadd.f32 %v574_v42, %v1454_v17  ;;  %v1180_v44 = vpop.f32.mrb[5].mxu1  ;;  %v578_v46 = vadd.f32 %v574_v42, %v502_v45  ;;  %v814_v42 = vld [vmem:[#allocation2 + $0x30] sm:$0xff] }
 0x901   :  { %587 = vrot.lane.b32.xlu1 %v585_v43, %s1362_s2  ;;  %v1056_v47 = vmul.f32 -1.442695, %v578_v46 }
 0x903   :  { %1305 = vpow2.f32 %v1056_v47 }
 0x90d   :  { %v1306_v48 = vpop.eup %1305 }
 0x90e   :  { %v582_v49 = vadd.f32 1.0, %v1306_v48 }
 0x910   :  { %1307 = vrcp.f32 %v582_v49 }
 0x91a   :  { %v1308_v50 = vpop.eup %1307 }
 0x91b   :  { %v597_v56 = vsub.f32 1.0, %v1308_v50  ;;  %v603_v58 = vmul.f32 %v1308_v50, %v500_v40 }
 0x973   :  { %v588_v51 = vpop.permute.xlu1 %587 }
 0x974   :  { %v590_v52 = vmul.f32 %v1308_v50, %v588_v51 }
 0x976   :  { %592 = vrot.lane.b32.xlu0 %v590_v52, %s1362_s2 }
 0x9e8   :  { %v593_v53 = vpop.permute.xlu0 %592 }
 0x9e9   :  { %v595_v54 = vadd.f32 %v593_v53, %v502_v45 }
 0x9eb   :  { %1309 = vtanh.f32 %v595_v54 }
 0x9f5   :  { %v1310_v55 = vpop.eup %1309 }
 0x9f6   :  { %599 = vrot.lane.b32.xlu1 %v1310_v55, %s1363_s3 }
 0xa68   :  { %v600_v57 = vpop.permute.xlu1 %599 }
 0xa69   :  { %v602_v59 = vmul.f32 %v600_v57, %v597_v56 }
 0xa6b   :  { %v604_v60 = vadd.f32 %v603_v58, %v602_v59 }
 0xa6d   :  { %608 = vrot.lane.b32.xlu0 %v604_v60, %s1363_s3 }
 0xadf   :  { %v609_v61 = vpop.permute.xlu0 %608 }
 0xae0   :  { %1190 = vmatmul.mubr.msk.f32.vlgmr.msra.gmra.mrb[10].mxu0 %vm40_vm1, %v609_v61 }
 0xae1   :  { %1271 = vmatpush3.bf16.msra.mxu0 %v1416_v9  ;;  %1211 = vmatprep.mubr.msk.f32.mxu0 %vm1360_vm0, %v1361_v8 }
 0xae2   :  { %1272 = vmatprep.subr.bf16.mxu0 %v1359_v3 }
 0xae5   :  { %1274 = vmatpush3.bf16.msra.mxu0 %v1432_v15 }
 0xbb3   :  { %v678_v62 = vpop.f32.mrb[10].mxu0 }
 0xbb4   :  { %v689_v63 = vadd.f32 %v678_v62, %v1454_v17  ;;  %v1191_v0 = vpop.f32.mrb[11].mxu0  ;;  %v682_v2 = vadd.f32 %v678_v62, %v606_v1  ;;  %v918_v62 = vld [vmem:[#allocation2 + $0x38] sm:$0xff] }
 0xbb6   :  { %691 = vrot.lane.b32.xlu1 %v689_v63, %s1362_s2  ;;  %v1058_v4 = vmul.f32 -1.442695, %v682_v2 }
 0xbb8   :  { %1311 = vpow2.f32 %v1058_v4 }
 0xbc2   :  { %v1312_v5 = vpop.eup %1311 }
 0xbc3   :  { %v686_v6 = vadd.f32 1.0, %v1312_v5 }
 0xbc5   :  { %1313 = vrcp.f32 %v686_v6 }
 0xbcf   :  { %v1314_v7 = vpop.eup %1313 }
 0xbd0   :  { %v701_v16 = vsub.f32 1.0, %v1314_v7  ;;  %v707_v20 = vmul.f32 %v1314_v7, %v604_v60 }
 0xc28   :  { %v692_v10 = vpop.permute.xlu1 %691 }
 0xc29   :  { %v694_v11 = vmul.f32 %v1314_v7, %v692_v10 }
 0xc2b   :  { %696 = vrot.lane.b32.xlu0 %v694_v11, %s1362_s2 }
 0xc9d   :  { %v697_v12 = vpop.permute.xlu0 %696 }
 0xc9e   :  { %v699_v13 = vadd.f32 %v697_v12, %v606_v1 }
 0xca0   :  { %1315 = vtanh.f32 %v699_v13 }
 0xcaa   :  { %v1316_v14 = vpop.eup %1315 }
 0xcab   :  { %703 = vrot.lane.b32.xlu1 %v1316_v14, %s1363_s3 }
 0xd1d   :  { %v704_v19 = vpop.permute.xlu1 %703 }
 0xd1e   :  { %v706_v21 = vmul.f32 %v704_v19, %v701_v16 }
 0xd20   :  { %v708_v22 = vadd.f32 %v707_v20, %v706_v21 }
 0xd22   :  { %712 = vrot.lane.b32.xlu0 %v708_v22, %s1363_s3 }
 0xd94   :  { %v713_v23 = vpop.permute.xlu0 %712 }
 0xd95   :  { %1201 = vmatmul.mubr.msk.f32.vlgmr.msra.gmra.mrb[6].mxu1 %vm40_vm1, %v713_v23 }
 0xd96   :  { %1277 = vmatpush3.bf16.msra.mxu1 %v1416_v9  ;;  %1222 = vmatprep.mubr.msk.f32.mxu1 %vm1360_vm0, %v1361_v8 }
 0xd97   :  { %1278 = vmatprep.subr.bf16.mxu1 %v1359_v3 }
 0xd9a   :  { %1280 = vmatpush3.bf16.msra.mxu1 %v1432_v15 }
 0xe68   :  { %v782_v18 = vpop.f32.mrb[6].mxu1 }
 0xe69   :  { %v793_v24 = vadd.f32 %v782_v18, %v1454_v17  ;;  %v1202_v25 = vpop.f32.mrb[7].mxu1  ;;  %v786_v27 = vadd.f32 %v782_v18, %v710_v26 }
 0xe6b   :  { %795 = vrot.lane.b32.xlu1 %v793_v24, %s1362_s2  ;;  %v1060_v28 = vmul.f32 -1.442695, %v786_v27 }
 0xe6d   :  { %1317 = vpow2.f32 %v1060_v28 }
 0xe77   :  { %v1318_v29 = vpop.eup %1317 }
 0xe78   :  { %v790_v30 = vadd.f32 1.0, %v1318_v29 }
 0xe7a   :  { %1319 = vrcp.f32 %v790_v30 }
 0xe84   :  { %v1320_v9 = vpop.eup %1319 }
 0xe85   :  { %v805_v33 = vsub.f32 1.0, %v1320_v9  ;;  %v811_v35 = vmul.f32 %v1320_v9, %v708_v22 }
 0xedd   :  { %v796_v31 = vpop.permute.xlu1 %795 }
 0xede   :  { %v798_v8 = vmul.f32 %v1320_v9, %v796_v31 }
 0xee0   :  { %800 = vrot.lane.b32.xlu0 %v798_v8, %s1362_s2 }
 0xf52   :  { %v801_v3 = vpop.permute.xlu0 %800 }
 0xf53   :  { %v803_v15 = vadd.f32 %v801_v3, %v710_v26 }
 0xf55   :  { %1321 = vtanh.f32 %v803_v15 }
 0xf5f   :  { %v1322_v32 = vpop.eup %1321 }
 0xf60   :  { %807 = vrot.lane.b32.xlu1 %v1322_v32, %s1363_s3 }
 0xfd2   :  { %v808_v34 = vpop.permute.xlu1 %807 }
 0xfd3   :  { %v810_v36 = vmul.f32 %v808_v34, %v805_v33 }
 0xfd5   :  { %v812_v37 = vadd.f32 %v811_v35, %v810_v36 }
 0xfd7   :  { %816 = vrot.lane.b32.xlu0 %v812_v37, %s1363_s3 }
0x1049   :  { %v817_v38 = vpop.permute.xlu0 %816 }
0x104a   :  { %1212 = vmatmul.mubr.msk.f32.vlgmr.msra.gmra.mrb[12].mxu0 %vm40_vm1, %v817_v38 }
0x111d   :  { %v886_v39 = vpop.f32.mrb[12].mxu0 }
0x111e   :  { %v897_v40 = vadd.f32 %v886_v39, %v1454_v17  ;;  %v1213_v41 = vpop.f32.mrb[13].mxu0  ;;  %v890_v43 = vadd.f32 %v886_v39, %v814_v42 }
0x1120   :  { %899 = vrot.lane.b32.xlu1 %v897_v40, %s1362_s2  ;;  %v1062_v44 = vmul.f32 -1.442695, %v890_v43 }
0x1122   :  { %1323 = vpow2.f32 %v1062_v44 }
0x112c   :  { %v1324_v45 = vpop.eup %1323 }
0x112d   :  { %v894_v46 = vadd.f32 1.0, %v1324_v45 }
0x112f   :  { %1325 = vrcp.f32 %v894_v46 }
0x1139   :  { %v1326_v47 = vpop.eup %1325 }
0x113a   :  { %v909_v53 = vsub.f32 1.0, %v1326_v47  ;;  %v915_v55 = vmul.f32 %v1326_v47, %v812_v37 }
0x1192   :  { %v900_v48 = vpop.permute.xlu1 %899 }
0x1193   :  { %v902_v49 = vmul.f32 %v1326_v47, %v900_v48 }
0x1195   :  { %904 = vrot.lane.b32.xlu0 %v902_v49, %s1362_s2 }
0x1207   :  { %v905_v50 = vpop.permute.xlu0 %904 }
0x1208   :  { %v907_v51 = vadd.f32 %v905_v50, %v814_v42 }
0x120a   :  { %1327 = vtanh.f32 %v907_v51 }
0x1214   :  { %v1328_v52 = vpop.eup %1327 }
0x1215   :  { %911 = vrot.lane.b32.xlu1 %v1328_v52, %s1363_s3 }
0x1287   :  { %v912_v54 = vpop.permute.xlu1 %911 }
0x1288   :  { %v914_v56 = vmul.f32 %v912_v54, %v909_v53 }
0x128a   :  { %v916_v57 = vadd.f32 %v915_v55, %v914_v56 }
0x128c   :  { %920 = vrot.lane.b32.xlu0 %v916_v57, %s1363_s3 }
0x12fe   :  { %v921_v58 = vpop.permute.xlu0 %920 }
0x12ff   :  { %1223 = vmatmul.mubr.msk.f32.vlgmr.msra.gmra.mrb[8].mxu1 %vm40_vm1, %v921_v58 }
0x13d2   :  { %v990_v59 = vpop.f32.mrb[8].mxu1 }
0x13d3   :  { %v1001_v60 = vadd.f32 %v990_v59, %v1454_v17  ;;  %v1224_v61 = vpop.f32.mrb[9].mxu1  ;;  %v994_v63 = vadd.f32 %v990_v59, %v918_v62 }
0x13d5   :  { %1003 = vrot.lane.b32.xlu1 %v1001_v60, %s1362_s2  ;;  %v1064_v0 = vmul.f32 -1.442695, %v994_v63 }
0x13d7   :  { %1329 = vpow2.f32 %v1064_v0 }
0x13e1   :  { %v1330_v1 = vpop.eup %1329 }
0x13e2   :  { %v998_v2 = vadd.f32 1.0, %v1330_v1 }
0x13e4   :  { %1331 = vrcp.f32 %v998_v2 }
0x13ee   :  { %v1332_v4 = vpop.eup %1331 }
0x13ef   :  { %v1013_v17 = vsub.f32 1.0, %v1332_v4  ;;  %v1019_v13 = vmul.f32 %v1332_v4, %v916_v57 }
0x1447   :  { %v1004_v5 = vpop.permute.xlu1 %1003 }
0x1448   :  { %v1006_v6 = vmul.f32 %v1332_v4, %v1004_v5 }
0x144a   :  { %1008 = vrot.lane.b32.xlu0 %v1006_v6, %s1362_s2 }
0x14bc   :  { %v1009_v7 = vpop.permute.xlu0 %1008 }
0x14bd   :  { %v1011_v10 = vadd.f32 %v1009_v7, %v918_v62 }
0x14bf   :  { %1333 = vtanh.f32 %v1011_v10 }
0x14c9   :  { %v1334_v11 = vpop.eup %1333 }
0x14ca   :  { %1015 = vrot.lane.b32.xlu1 %v1334_v11, %s1363_s3 }
0x153c   :  { %v1016_v12 = vpop.permute.xlu1 %1015 }
0x153d   :  { %v1018_v14 = vmul.f32 %v1016_v12, %v1013_v17 }
0x153f   :  { %v1020_v16 = vadd.f32 %v1019_v13, %v1018_v14 }
0x1541   :  { %1022 = vrot.lane.b32.xlu0 %v1020_v16, %s1363_s3 }
0x15b3   :  { %v1023_v19 = vpop.permute.xlu0 %1022 }
0x15b4   :  { %1025 = vst.msk [vmem:[#allocation3] sm:$0xff] %vm40_vm1, %v1023_v19 }
0x15b5   :  { %1346 = shalt.err (!%p1343_p4)
}
0x15b6   :  { %s1347_s6 = scalar_lea.hbm %s1596_s5, 128 }
0x15b7   :  { %p1348_p5 = scmp.ne.s32.totalorder %s1596_s5, %s1347_s6  ;;  %p1351_p6 = scmp.lt.u32.totalorder %s1347_s6, %s1596_s5 }
0x15b9   :  { %p1353_p7 = pnand %p1351_p6, %p1348_p5 }
0x15bb   :  { %1356 = shalt.err (!%p1353_p7)
}
0x15bc   :  { %1035 = dma.vmem_to_hbm [thread:$0]  %s1033_s27, 128, %s1596_s5, [#allocation4]  }
0x15bd   :  { %1357 = dma.done.wait [#allocation4], 128  }
0x15be   :  { %1358 = vsyncadd [#allocation4], 4294967168 }
0x15bf   :  { %1039 = vsyncpa [#allocation4], 1 }

</bundles_post_ra>
